<compile_context>
chip_gen: v7x
topology: tpu7x:2x2x1
jax: 0.10.0
libtpu: 0.0.40
codegen_flags: <defaults>
</compile_context>

<pallas_src>
import jax
import jax.numpy as jnp
from jax.experimental import pallas as pl
from jax.experimental.pallas import tpu as pltpu


def _round_up(x, m):
    return ((x + m - 1) // m) * m


def _round_down(x, m):
    return max(m, (x // m) * m)


def _nbytes(shape, dtype):
    n = 1
    for s in shape:
        n *= int(s)
    return n * jnp.dtype(dtype).itemsize


def _vmem_capacity_bytes():
    # Per-TensorCore VMEM: 128 MiB on v5e/v6e, 64 MiB on v7x.
    try:
        return int(pltpu.get_tpu_info().vmem_capacity_bytes)
    except Exception:
        return 64 << 20  # conservative default (v7x per-TC)


def _mlp_kernel(x_ref, w1_ref, b1_ref, w2_ref, b2_ref, w3_ref, b3_ref, o_ref):
    # Hoist the (1, N) f32 bias reads once per grid step.
    b1 = b1_ref[...]
    b2 = b2_ref[...]
    b3 = b3_ref[...]

    # Layer 1: Linear (bf16 MXU operands, f32 accumulation) + ReLU.
    # astype is a no-op if the caller already streams x as bf16 (halves the
    # dominant HBM read in the weights-resident regime).
    h1 = jnp.dot(x_ref[...].astype(jnp.bfloat16), w1_ref[...],
                 preferred_element_type=jnp.float32)
    h1 = jnp.maximum(h1 + b1, 0.0)
    # Dropout(0.3) == identity at inference.

    # Layer 2: Linear + ReLU.
    h2 = jnp.dot(h1.astype(jnp.bfloat16), w2_ref[...],
                 preferred_element_type=jnp.float32)
    h2 = jnp.maximum(h2 + b2, 0.0)
    # Dropout(0.3) == identity at inference.

    # Layer 3: Linear + Sigmoid.  sigmoid(z) = 1 / (1 + exp(-z)); the exp and
    # the approx reciprocal both use the EUP slot, off the VALU critical path.
    logits = jnp.dot(h2.astype(jnp.bfloat16), w3_ref[...],
                     preferred_element_type=jnp.float32) + b3
    o_ref[...] = pl.reciprocal(1.0 + jnp.exp(-logits), approx=True)


def multilabel_classifier_forward(x, params, *, max_batch_tile=2048):
    """x: (B, input_dim) f32/bf16; params: transposed bf16 weights + (1,N) f32 biases."""
    w1, b1 = params["w1"], params["b1"]
    w2, b2 = params["w2"], params["b2"]
    w3, b3 = params["w3"], params["b3"]

    B, in_dim = x.shape
    hid = w1.shape[1]
    hid2 = w2.shape[1]
    out_dim = w3.shape[1]

    # ---- Generation-aware VMEM budgeting & batch-tile sizing ----------------
    cap = _vmem_capacity_bytes()
    # Grid-invariant weights/biases: single-buffered (Buffered(1)) residents.
    resident = (_nbytes(w1.shape, w1.dtype) + _nbytes(w2.shape, w2.dtype)
                + _nbytes(w3.shape, w3.dtype)
                + _nbytes(b1.shape, b1.dtype) + _nbytes(b2.shape, b2.dtype)
                + _nbytes(b3.shape, b3.dtype))
    x_itemsize = jnp.dtype(x.dtype).itemsize
    # Per-row streamed/live bytes: double-buffered x and out tiles plus the
    # f32 / bf16 intermediates the kernel body materializes.
    row_bytes = (2 * in_dim * x_itemsize            # x tile (2 buffers)
                 + 2 * out_dim * 4                  # out tile (2 buffers, f32)
                 + 4 * (hid + hid2 + out_dim)       # f32 h1 / h2 / logits
                 + 2 * (in_dim + hid + hid2))       # bf16 MXU operand copies
    budget = int(0.7 * cap) - resident
    tb_cap = _round_down(max(budget, 8 * row_bytes) // row_bytes, 8)
    # Big tiles (>=512 rows) approach the HBM roofline; multiple of 8 sublanes.
    TB = max(8, min(max_batch_tile, _round_up(B, 8), tb_cap))
    grid = (pl.cdiv(B, TB),)

    vmem_bytes = resident + TB * row_bytes + (4 << 20)  # + compiler headroom
    vmem_bytes = int(min(max(vmem_bytes, 16 << 20), cap - (8 << 20)))

    # ---- Advisory cost estimate so XLA can overlap surrounding ops ----------
    flops = 2 * B * (in_dim * hid + hid * hid2 + hid2 * out_dim)
    bytes_accessed = (_nbytes(x.shape, x.dtype) + resident
                      + _nbytes((B, out_dim), jnp.float32))
    cost = pl.CostEstimate(flops=int(flops),
                           transcendentals=int(B * out_dim),
                           bytes_accessed=int(bytes_accessed))

    def build(dim_semantics, single_buffer_weights):
        if single_buffer_weights:
            def pinned(shape):
                return pl.BlockSpec(shape, lambda i: (0,) * len(shape),
                                    pipeline_mode=pl.Buffered(1))
        else:
            def pinned(shape):
                return pl.BlockSpec(shape, lambda i: (0,) * len(shape))

        return pl.pallas_call(
            _mlp_kernel,
            # Unpadded output: last block dim equals the full array dim (legal
            # masked vst).  For tiny out_dim this beats padding to 128 lanes
            # (16x less writeback, no post-kernel slice).  NOTE: if the real
            # model has a large out_dim that is not a multiple of 128, a padded
            # lane-dense output block may win instead.
            out_shape=jax.ShapeDtypeStruct((B, out_dim), jnp.float32),
            grid=grid,
            in_specs=[
                pl.BlockSpec((TB, in_dim), lambda i: (i, 0)),
                pinned(w1.shape), pinned(b1.shape),
                pinned(w2.shape), pinned(b2.shape),
                pinned(w3.shape), pinned(b3.shape),
            ],
            out_specs=pl.BlockSpec((TB, out_dim), lambda i: (i, 0)),
            compiler_params=pltpu.CompilerParams(
                dimension_semantics=dim_semantics,
                vmem_limit_bytes=vmem_bytes,
            ),
            cost_estimate=cost,
        )

    # Preferred: CORE_PARALLEL (real 2-TC sharding on v7x) + single-buffered
    # resident weights.  Fall back to safer configs if the current chip / jax
    # build rejects either option, so the kernel always runs.
    configs = (
        ((pltpu.CORE_PARALLEL,), True),
        (("parallel",), True),
        (("parallel",), False),
    )
    last_err = None
    for sem, single_buf in configs:
        try:
            out = build(sem, single_buf)(x, w1, b1, w2, b2, w3, b3)
            return jax.block_until_ready(out)
        except Exception as e:  # fall back to a safer configuration
            last_err = e
    raise last_err


def init_params(key, input_dim, hidden_dim, output_dim):
    """Mimics nn.Linear init: uniform(-1/sqrt(fan_in), 1/sqrt(fan_in)).

    Weights stored transposed ((in_features, out_features)) and cast to bf16
    (MXU operands, intentional ~1e-2-level error vs f32 PyTorch); biases stay
    f32 as (1, out_features).  For non-toy dims, pad in/hid/hid2 to multiples
    of 256 (v6e/v7x MXU) if the kernel ever becomes MXU-bound.
    """
    dims = [(input_dim, hidden_dim),
            (hidden_dim, hidden_dim // 2),
            (hidden_dim // 2, output_dim)]
    params = {}
    keys = jax.random.split(key, 2 * len(dims))
    for i, (fan_in, fan_out) in enumerate(dims):
        bound = 1.0 / float(fan_in) ** 0.5
        w = jax.random.uniform(keys[2 * i], (fan_in, fan_out),
                               jnp.float32, -bound, bound)
        b = jax.random.uniform(keys[2 * i + 1], (1, fan_out),
                               jnp.float32, -bound, bound)
        params[f"w{i + 1}"] = w.astype(jnp.bfloat16)
        params[f"b{i + 1}"] = b
    return params


def _reference_forward(x, params):
    """Pure-jnp f32 reference of the module's forward (dropout = identity)."""
    h = jnp.maximum(jnp.dot(x, params["w1"].astype(jnp.float32)) + params["b1"], 0.0)
    h = jnp.maximum(jnp.dot(h, params["w2"].astype(jnp.float32)) + params["b2"], 0.0)
    return jax.nn.sigmoid(jnp.dot(h, params["w3"].astype(jnp.float32)) + params["b3"])


if __name__ == "__main__":
    input_dim, hidden_dim, output_dim = 32, 32, 8

    key = jax.random.PRNGKey(0)
    k_x, k_x2, k_p = jax.random.split(key, 3)
    params = init_params(k_p, input_dim, hidden_dim, output_dim)

    # Case 1: small batch, single full tile.
    x = jax.random.normal(k_x, (8, input_dim), dtype=jnp.float32)
    out = multilabel_classifier_forward(x, params)
    out = jax.block_until_ready(out)
    ref = _reference_forward(x, params)
    assert out.shape == (8, output_dim)
    assert bool(jnp.all((out >= 0.0) & (out <= 1.0)))
    assert bool(jnp.all(jnp.isfinite(out)))
    assert bool(jnp.allclose(out, ref, atol=2e-2)), float(jnp.max(jnp.abs(out - ref)))

    # Case 2: B not a multiple of the batch tile (partial last tile writeback).
    x2 = jax.random.normal(k_x2, (20, input_dim), dtype=jnp.float32)
    out2 = multilabel_classifier_forward(x2, params, max_batch_tile=8)
    out2 = jax.block_until_ready(out2)
    ref2 = _reference_forward(x2, params)
    assert out2.shape == (20, output_dim)
    assert bool(jnp.all(jnp.isfinite(out2)))
    assert bool(jnp.allclose(out2, ref2, atol=2e-2)), float(jnp.max(jnp.abs(out2 - ref2)))

    print("KERNEL_OK")
</pallas_src>

<mosaic_0001>
module attributes {stable_mosaic.version = 11 : i64} {
  func.func @_mlp_kernel(%arg0: i32, %arg1: memref<8x32xf32, #tpu.memory_space<vmem>>, %arg2: memref<32x32xbf16, #tpu.memory_space<vmem>>, %arg3: memref<1x32xf32, #tpu.memory_space<vmem>>, %arg4: memref<32x16xbf16, #tpu.memory_space<vmem>>, %arg5: memref<1x16xf32, #tpu.memory_space<vmem>>, %arg6: memref<16x8xbf16, #tpu.memory_space<vmem>>, %arg7: memref<1x8xf32, #tpu.memory_space<vmem>>, %arg8: memref<8x8xf32, #tpu.memory_space<vmem>>) attributes {dimension_semantics = [#tpu.dimension_semantics<core_parallel>], iteration_bounds = array<i64: 1>, scalar_prefetch = 0 : i64, scratch_operands = 0 : i64, tpu.core_type = #tpu.core_type<tc>, window_params = [{transform_indices = @transform_0, window_bounds = array<i64: 8, 32>}, {pipeline_mode = #tpu.pipeline_mode<synchronous>, transform_indices = @transform_1, window_bounds = array<i64: 32, 32>}, {pipeline_mode = #tpu.pipeline_mode<synchronous>, transform_indices = @transform_2, window_bounds = array<i64: 1, 32>}, {pipeline_mode = #tpu.pipeline_mode<synchronous>, transform_indices = @transform_3, window_bounds = array<i64: 32, 16>}, {pipeline_mode = #tpu.pipeline_mode<synchronous>, transform_indices = @transform_4, window_bounds = array<i64: 1, 16>}, {pipeline_mode = #tpu.pipeline_mode<synchronous>, transform_indices = @transform_5, window_bounds = array<i64: 16, 8>}, {pipeline_mode = #tpu.pipeline_mode<synchronous>, transform_indices = @transform_6, window_bounds = array<i64: 1, 8>}, {transform_indices = @transform_7, window_bounds = array<i64: 8, 8>}]} {
    %c0 = arith.constant 0 : index
    %c0_0 = arith.constant 0 : index
    %0 = vector.load %arg3[%c0, %c0_0] : memref<1x32xf32, #tpu.memory_space<vmem>>, vector<1x32xf32>
    %c0_1 = arith.constant 0 : index
    %c0_2 = arith.constant 0 : index
    %1 = vector.load %arg5[%c0_1, %c0_2] : memref<1x16xf32, #tpu.memory_space<vmem>>, vector<1x16xf32>
    %c0_3 = arith.constant 0 : index
    %c0_4 = arith.constant 0 : index
    %2 = vector.load %arg7[%c0_3, %c0_4] : memref<1x8xf32, #tpu.memory_space<vmem>>, vector<1x8xf32>
    %c0_5 = arith.constant 0 : index
    %c0_6 = arith.constant 0 : index
    %3 = vector.load %arg1[%c0_5, %c0_6] : memref<8x32xf32, #tpu.memory_space<vmem>>, vector<8x32xf32>
    %4 = arith.truncf %3 : vector<8x32xf32> to vector<8x32xbf16>
    %c0_7 = arith.constant 0 : index
    %c0_8 = arith.constant 0 : index
    %5 = vector.load %arg2[%c0_7, %c0_8] : memref<32x32xbf16, #tpu.memory_space<vmem>>, vector<32x32xbf16>
    %cst = arith.constant dense<0.000000e+00> : vector<8x32xf32>
    %6 = tpu.matmul %4, %5, %cst {dimension_numbers = #tpu.dot_dimension_numbers<[1], [0], [0], [1], [0, 0, 1, 1], [], []>} : vector<8x32xbf16>, vector<32x32xbf16>, vector<8x32xf32> -> vector<8x32xf32>
    %7 = vector.broadcast %0 : vector<1x32xf32> to vector<8x32xf32>
    %8 = arith.addf %6, %7 : vector<8x32xf32>
    %cst_9 = arith.constant 0.000000e+00 : f32
    %9 = vector.broadcast %cst_9 : f32 to vector<8x32xf32>
    %10 = arith.maximumf %8, %9 : vector<8x32xf32>
    %11 = arith.truncf %10 : vector<8x32xf32> to vector<8x32xbf16>
    %c0_10 = arith.constant 0 : index
    %c0_11 = arith.constant 0 : index
    %12 = vector.load %arg4[%c0_10, %c0_11] : memref<32x16xbf16, #tpu.memory_space<vmem>>, vector<32x16xbf16>
    %cst_12 = arith.constant dense<0.000000e+00> : vector<8x16xf32>
    %13 = tpu.matmul %11, %12, %cst_12 {dimension_numbers = #tpu.dot_dimension_numbers<[1], [0], [0], [1], [0, 0, 1, 1], [], []>} : vector<8x32xbf16>, vector<32x16xbf16>, vector<8x16xf32> -> vector<8x16xf32>
    %14 = vector.broadcast %1 : vector<1x16xf32> to vector<8x16xf32>
    %15 = arith.addf %13, %14 : vector<8x16xf32>
    %cst_13 = arith.constant 0.000000e+00 : f32
    %16 = vector.broadcast %cst_13 : f32 to vector<8x16xf32>
    %17 = arith.maximumf %15, %16 : vector<8x16xf32>
    %18 = arith.truncf %17 : vector<8x16xf32> to vector<8x16xbf16>
    %c0_14 = arith.constant 0 : index
    %c0_15 = arith.constant 0 : index
    %19 = vector.load %arg6[%c0_14, %c0_15] : memref<16x8xbf16, #tpu.memory_space<vmem>>, vector<16x8xbf16>
    %cst_16 = arith.constant dense<0.000000e+00> : vector<8x8xf32>
    %20 = tpu.matmul %18, %19, %cst_16 {dimension_numbers = #tpu.dot_dimension_numbers<[1], [0], [0], [1], [0, 0, 1, 1], [], []>} : vector<8x16xbf16>, vector<16x8xbf16>, vector<8x8xf32> -> vector<8x8xf32>
    %21 = vector.broadcast %2 : vector<1x8xf32> to vector<8x8xf32>
    %22 = arith.addf %20, %21 : vector<8x8xf32>
    %cst_17 = arith.constant 0.000000e+00 : f32
    %23 = vector.broadcast %cst_17 : f32 to vector<8x8xf32>
    %24 = arith.subf %23, %22 : vector<8x8xf32>
    %25 = math.exp %24 : vector<8x8xf32>
    %cst_18 = arith.constant 1.000000e+00 : f32
    %26 = vector.broadcast %cst_18 : f32 to vector<8x8xf32>
    %27 = arith.addf %26, %25 : vector<8x8xf32>
    %28 = tpu.reciprocal %27 {approx = true} : vector<8x8xf32> -> vector<8x8xf32>
    %c0_19 = arith.constant 0 : index
    %c0_20 = arith.constant 0 : index
    %29 = vector.load %arg8[%c0_19, %c0_20] : memref<8x8xf32, #tpu.memory_space<vmem>>, vector<8x8xf32>
    tpu.vector_store %arg8[%c0_19, %c0_20], %28 {strides = array<i32>} : memref<8x8xf32, #tpu.memory_space<vmem>>, vector<8x8xf32>,
    return
  }
  func.func @transform_0(%arg0: i32) -> (i32, i32) {
    %c0_i32 = arith.constant 0 : i32
    %c0_i32_0 = arith.constant 0 : i32
    return %arg0, %c0_i32 : i32, i32
  }
  func.func @transform_1(%arg0: i32) -> (i32, i32) {
    %c0_i32 = arith.constant 0 : i32
    %c0_i32_0 = arith.constant 0 : i32
    %c0_i32_1 = arith.constant 0 : i32
    return %c0_i32, %c0_i32_0 : i32, i32
  }
  func.func @transform_2(%arg0: i32) -> (i32, i32) {
    %c0_i32 = arith.constant 0 : i32
    %c0_i32_0 = arith.constant 0 : i32
    %c0_i32_1 = arith.constant 0 : i32
    return %c0_i32, %c0_i32_0 : i32, i32
  }
  func.func @transform_3(%arg0: i32) -> (i32, i32) {
    %c0_i32 = arith.constant 0 : i32
    %c0_i32_0 = arith.constant 0 : i32
    %c0_i32_1 = arith.constant 0 : i32
    return %c0_i32, %c0_i32_0 : i32, i32
  }
  func.func @transform_4(%arg0: i32) -> (i32, i32) {
    %c0_i32 = arith.constant 0 : i32
    %c0_i32_0 = arith.constant 0 : i32
    %c0_i32_1 = arith.constant 0 : i32
    return %c0_i32, %c0_i32_0 : i32, i32
  }
  func.func @transform_5(%arg0: i32) -> (i32, i32) {
    %c0_i32 = arith.constant 0 : i32
    %c0_i32_0 = arith.constant 0 : i32
    %c0_i32_1 = arith.constant 0 : i32
    return %c0_i32, %c0_i32_0 : i32, i32
  }
  func.func @transform_6(%arg0: i32) -> (i32, i32) {
    %c0_i32 = arith.constant 0 : i32
    %c0_i32_0 = arith.constant 0 : i32
    %c0_i32_1 = arith.constant 0 : i32
    return %c0_i32, %c0_i32_0 : i32, i32
  }
  func.func @transform_7(%arg0: i32) -> (i32, i32) {
    %c0_i32 = arith.constant 0 : i32
    %c0_i32_0 = arith.constant 0 : i32
    return %arg0, %c0_i32 : i32, i32
  }
}

module attributes {stable_mosaic.version = 11 : i64} {
  func.func @_mlp_kernel(%arg0: i32, %arg1: memref<8x32xf32, #tpu.memory_space<vmem>>, %arg2: memref<32x32xbf16, #tpu.memory_space<vmem>>, %arg3: memref<1x32xf32, #tpu.memory_space<vmem>>, %arg4: memref<32x16xbf16, #tpu.memory_space<vmem>>, %arg5: memref<1x16xf32, #tpu.memory_space<vmem>>, %arg6: memref<16x8xbf16, #tpu.memory_space<vmem>>, %arg7: memref<1x8xf32, #tpu.memory_space<vmem>>, %arg8: memref<8x8xf32, #tpu.memory_space<vmem>>) attributes {dimension_semantics = [#tpu.dimension_semantics<parallel>], iteration_bounds = array<i64: 1>, scalar_prefetch = 0 : i64, scratch_operands = 0 : i64, tpu.core_type = #tpu.core_type<tc>, window_params = [{transform_indices = @transform_0, window_bounds = array<i64: 8, 32>}, {pipeline_mode = #tpu.pipeline_mode<synchronous>, transform_indices = @transform_1, window_bounds = array<i64: 32, 32>}, {pipeline_mode = #tpu.pipeline_mode<synchronous>, transform_indices = @transform_2, window_bounds = array<i64: 1, 32>}, {pipeline_mode = #tpu.pipeline_mode<synchronous>, transform_indices = @transform_3, window_bounds = array<i64: 32, 16>}, {pipeline_mode = #tpu.pipeline_mode<synchronous>, transform_indices = @transform_4, window_bounds = array<i64: 1, 16>}, {pipeline_mode = #tpu.pipeline_mode<synchronous>, transform_indices = @transform_5, window_bounds = array<i64: 16, 8>}, {pipeline_mode = #tpu.pipeline_mode<synchronous>, transform_indices = @transform_6, window_bounds = array<i64: 1, 8>}, {transform_indices = @transform_7, window_bounds = array<i64: 8, 8>}]} {
    %c0 = arith.constant 0 : index
    %c0_0 = arith.constant 0 : index
    %0 = vector.load %arg3[%c0, %c0_0] : memref<1x32xf32, #tpu.memory_space<vmem>>, vector<1x32xf32>
    %c0_1 = arith.constant 0 : index
    %c0_2 = arith.constant 0 : index
    %1 = vector.load %arg5[%c0_1, %c0_2] : memref<1x16xf32, #tpu.memory_space<vmem>>, vector<1x16xf32>
    %c0_3 = arith.constant 0 : index
    %c0_4 = arith.constant 0 : index
    %2 = vector.load %arg7[%c0_3, %c0_4] : memref<1x8xf32, #tpu.memory_space<vmem>>, vector<1x8xf32>
    %c0_5 = arith.constant 0 : index
    %c0_6 = arith.constant 0 : index
    %3 = vector.load %arg1[%c0_5, %c0_6] : memref<8x32xf32, #tpu.memory_space<vmem>>, vector<8x32xf32>
    %4 = arith.truncf %3 : vector<8x32xf32> to vector<8x32xbf16>
    %c0_7 = arith.constant 0 : index
    %c0_8 = arith.constant 0 : index
    %5 = vector.load %arg2[%c0_7, %c0_8] : memref<32x32xbf16, #tpu.memory_space<vmem>>, vector<32x32xbf16>
    %cst = arith.constant dense<0.000000e+00> : vector<8x32xf32>
    %6 = tpu.matmul %4, %5, %cst {dimension_numbers = #tpu.dot_dimension_numbers<[1], [0], [0], [1], [0, 0, 1, 1], [], []>} : vector<8x32xbf16>, vector<32x32xbf16>, vector<8x32xf32> -> vector<8x32xf32>
    %7 = vector.broadcast %0 : vector<1x32xf32> to vector<8x32xf32>
    %8 = arith.addf %6, %7 : vector<8x32xf32>
    %cst_9 = arith.constant 0.000000e+00 : f32
    %9 = vector.broadcast %cst_9 : f32 to vector<8x32xf32>
    %10 = arith.maximumf %8, %9 : vector<8x32xf32>
    %11 = arith.truncf %10 : vector<8x32xf32> to vector<8x32xbf16>
    %c0_10 = arith.constant 0 : index
    %c0_11 = arith.constant 0 : index
    %12 = vector.load %arg4[%c0_10, %c0_11] : memref<32x16xbf16, #tpu.memory_space<vmem>>, vector<32x16xbf16>
    %cst_12 = arith.constant dense<0.000000e+00> : vector<8x16xf32>
    %13 = tpu.matmul %11, %12, %cst_12 {dimension_numbers = #tpu.dot_dimension_numbers<[1], [0], [0], [1], [0, 0, 1, 1], [], []>} : vector<8x32xbf16>, vector<32x16xbf16>, vector<8x16xf32> -> vector<8x16xf32>
    %14 = vector.broadcast %1 : vector<1x16xf32> to vector<8x16xf32>
    %15 = arith.addf %13, %14 : vector<8x16xf32>
    %cst_13 = arith.constant 0.000000e+00 : f32
    %16 = vector.broadcast %cst_13 : f32 to vector<8x16xf32>
    %17 = arith.maximumf %15, %16 : vector<8x16xf32>
    %18 = arith.truncf %17 : vector<8x16xf32> to vector<8x16xbf16>
    %c0_14 = arith.constant 0 : index
    %c0_15 = arith.constant 0 : index
    %19 = vector.load %arg6[%c0_14, %c0_15] : memref<16x8xbf16, #tpu.memory_space<vmem>>, vector<16x8xbf16>
    %cst_16 = arith.constant dense<0.000000e+00> : vector<8x8xf32>
    %20 = tpu.matmul %18, %19, %cst_16 {dimension_numbers = #tpu.dot_dimension_numbers<[1], [0], [0], [1], [0, 0, 1, 1], [], []>} : vector<8x16xbf16>, vector<16x8xbf16>, vector<8x8xf32> -> vector<8x8xf32>
    %21 = vector.broadcast %2 : vector<1x8xf32> to vector<8x8xf32>
    %22 = arith.addf %20, %21 : vector<8x8xf32>
    %cst_17 = arith.constant 0.000000e+00 : f32
    %23 = vector.broadcast %cst_17 : f32 to vector<8x8xf32>
    %24 = arith.subf %23, %22 : vector<8x8xf32>
    %25 = math.exp %24 : vector<8x8xf32>
    %cst_18 = arith.constant 1.000000e+00 : f32
    %26 = vector.broadcast %cst_18 : f32 to vector<8x8xf32>
    %27 = arith.addf %26, %25 : vector<8x8xf32>
    %28 = tpu.reciprocal %27 {approx = true} : vector<8x8xf32> -> vector<8x8xf32>
    %c0_19 = arith.constant 0 : index
    %c0_20 = arith.constant 0 : index
    %29 = vector.load %arg8[%c0_19, %c0_20] : memref<8x8xf32, #tpu.memory_space<vmem>>, vector<8x8xf32>
    tpu.vector_store %arg8[%c0_19, %c0_20], %28 {strides = array<i32>} : memref<8x8xf32, #tpu.memory_space<vmem>>, vector<8x8xf32>,
    return
  }
  func.func @transform_0(%arg0: i32) -> (i32, i32) {
    %c0_i32 = arith.constant 0 : i32
    %c0_i32_0 = arith.constant 0 : i32
    return %arg0, %c0_i32 : i32, i32
  }
  func.func @transform_1(%arg0: i32) -> (i32, i32) {
    %c0_i32 = arith.constant 0 : i32
    %c0_i32_0 = arith.constant 0 : i32
    %c0_i32_1 = arith.constant 0 : i32
    return %c0_i32, %c0_i32_0 : i32, i32
  }
  func.func @transform_2(%arg0: i32) -> (i32, i32) {
    %c0_i32 = arith.constant 0 : i32
    %c0_i32_0 = arith.constant 0 : i32
    %c0_i32_1 = arith.constant 0 : i32
    return %c0_i32, %c0_i32_0 : i32, i32
  }
  func.func @transform_3(%arg0: i32) -> (i32, i32) {
    %c0_i32 = arith.constant 0 : i32
    %c0_i32_0 = arith.constant 0 : i32
    %c0_i32_1 = arith.constant 0 : i32
    return %c0_i32, %c0_i32_0 : i32, i32
  }
  func.func @transform_4(%arg0: i32) -> (i32, i32) {
    %c0_i32 = arith.constant 0 : i32
    %c0_i32_0 = arith.constant 0 : i32
    %c0_i32_1 = arith.constant 0 : i32
    return %c0_i32, %c0_i32_0 : i32, i32
  }
  func.func @transform_5(%arg0: i32) -> (i32, i32) {
    %c0_i32 = arith.constant 0 : i32
    %c0_i32_0 = arith.constant 0 : i32
    %c0_i32_1 = arith.constant 0 : i32
    return %c0_i32, %c0_i32_0 : i32, i32
  }
  func.func @transform_6(%arg0: i32) -> (i32, i32) {
    %c0_i32 = arith.constant 0 : i32
    %c0_i32_0 = arith.constant 0 : i32
    %c0_i32_1 = arith.constant 0 : i32
    return %c0_i32, %c0_i32_0 : i32, i32
  }
  func.func @transform_7(%arg0: i32) -> (i32, i32) {
    %c0_i32 = arith.constant 0 : i32
    %c0_i32_0 = arith.constant 0 : i32
    return %arg0, %c0_i32 : i32, i32
  }
}

module attributes {stable_mosaic.version = 11 : i64} {
  func.func @_mlp_kernel(%arg0: i32, %arg1: memref<8x32xf32, #tpu.memory_space<vmem>>, %arg2: memref<32x32xbf16, #tpu.memory_space<vmem>>, %arg3: memref<1x32xf32, #tpu.memory_space<vmem>>, %arg4: memref<32x16xbf16, #tpu.memory_space<vmem>>, %arg5: memref<1x16xf32, #tpu.memory_space<vmem>>, %arg6: memref<16x8xbf16, #tpu.memory_space<vmem>>, %arg7: memref<1x8xf32, #tpu.memory_space<vmem>>, %arg8: memref<8x8xf32, #tpu.memory_space<vmem>>) attributes {dimension_semantics = [#tpu.dimension_semantics<parallel>], iteration_bounds = array<i64: 1>, scalar_prefetch = 0 : i64, scratch_operands = 0 : i64, tpu.core_type = #tpu.core_type<tc>, window_params = [{transform_indices = @transform_0, window_bounds = array<i64: 8, 32>}, {pipeline_mode = #tpu.pipeline_mode<synchronous>, transform_indices = @transform_1, window_bounds = array<i64: 32, 32>}, {pipeline_mode = #tpu.pipeline_mode<synchronous>, transform_indices = @transform_2, window_bounds = array<i64: 1, 32>}, {pipeline_mode = #tpu.pipeline_mode<synchronous>, transform_indices = @transform_3, window_bounds = array<i64: 32, 16>}, {pipeline_mode = #tpu.pipeline_mode<synchronous>, transform_indices = @transform_4, window_bounds = array<i64: 1, 16>}, {pipeline_mode = #tpu.pipeline_mode<synchronous>, transform_indices = @transform_5, window_bounds = array<i64: 16, 8>}, {pipeline_mode = #tpu.pipeline_mode<synchronous>, transform_indices = @transform_6, window_bounds = array<i64: 1, 8>}, {transform_indices = @transform_7, window_bounds = array<i64: 8, 8>}]} {
    %c0 = arith.constant 0 : index
    %c0_0 = arith.constant 0 : index
    %0 = vector.load %arg3[%c0, %c0_0] : memref<1x32xf32, #tpu.memory_space<vmem>>, vector<1x32xf32>
    %c0_1 = arith.constant 0 : index
    %c0_2 = arith.constant 0 : index
    %1 = vector.load %arg5[%c0_1, %c0_2] : memref<1x16xf32, #tpu.memory_space<vmem>>, vector<1x16xf32>
    %c0_3 = arith.constant 0 : index
    %c0_4 = arith.constant 0 : index
    %2 = vector.load %arg7[%c0_3, %c0_4] : memref<1x8xf32, #tpu.memory_space<vmem>>, vector<1x8xf32>
    %c0_5 = arith.constant 0 : index
    %c0_6 = arith.constant 0 : index
    %3 = vector.load %arg1[%c0_5, %c0_6] : memref<8x32xf32, #tpu.memory_space<vmem>>, vector<8x32xf32>
    %4 = arith.truncf %3 : vector<8x32xf32> to vector<8x32xbf16>
    %c0_7 = arith.constant 0 : index
    %c0_8 = arith.constant 0 : index
    %5 = vector.load %arg2[%c0_7, %c0_8] : memref<32x32xbf16, #tpu.memory_space<vmem>>, vector<32x32xbf16>
    %cst = arith.constant dense<0.000000e+00> : vector<8x32xf32>
    %6 = tpu.matmul %4, %5, %cst {dimension_numbers = #tpu.dot_dimension_numbers<[1], [0], [0], [1], [0, 0, 1, 1], [], []>} : vector<8x32xbf16>, vector<32x32xbf16>, vector<8x32xf32> -> vector<8x32xf32>
    %7 = vector.broadcast %0 : vector<1x32xf32> to vector<8x32xf32>
    %8 = arith.addf %6, %7 : vector<8x32xf32>
    %cst_9 = arith.constant 0.000000e+00 : f32
    %9 = vector.broadcast %cst_9 : f32 to vector<8x32xf32>
    %10 = arith.maximumf %8, %9 : vector<8x32xf32>
    %11 = arith.truncf %10 : vector<8x32xf32> to vector<8x32xbf16>
    %c0_10 = arith.constant 0 : index
    %c0_11 = arith.constant 0 : index
    %12 = vector.load %arg4[%c0_10, %c0_11] : memref<32x16xbf16, #tpu.memory_space<vmem>>, vector<32x16xbf16>
    %cst_12 = arith.constant dense<0.000000e+00> : vector<8x16xf32>
    %13 = tpu.matmul %11, %12, %cst_12 {dimension_numbers = #tpu.dot_dimension_numbers<[1], [0], [0], [1], [0, 0, 1, 1], [], []>} : vector<8x32xbf16>, vector<32x16xbf16>, vector<8x16xf32> -> vector<8x16xf32>
    %14 = vector.broadcast %1 : vector<1x16xf32> to vector<8x16xf32>
    %15 = arith.addf %13, %14 : vector<8x16xf32>
    %cst_13 = arith.constant 0.000000e+00 : f32
    %16 = vector.broadcast %cst_13 : f32 to vector<8x16xf32>
    %17 = arith.maximumf %15, %16 : vector<8x16xf32>
    %18 = arith.truncf %17 : vector<8x16xf32> to vector<8x16xbf16>
    %c0_14 = arith.constant 0 : index
    %c0_15 = arith.constant 0 : index
    %19 = vector.load %arg6[%c0_14, %c0_15] : memref<16x8xbf16, #tpu.memory_space<vmem>>, vector<16x8xbf16>
    %cst_16 = arith.constant dense<0.000000e+00> : vector<8x8xf32>
    %20 = tpu.matmul %18, %19, %cst_16 {dimension_numbers = #tpu.dot_dimension_numbers<[1], [0], [0], [1], [0, 0, 1, 1], [], []>} : vector<8x16xbf16>, vector<16x8xbf16>, vector<8x8xf32> -> vector<8x8xf32>
    %21 = vector.broadcast %2 : vector<1x8xf32> to vector<8x8xf32>
    %22 = arith.addf %20, %21 : vector<8x8xf32>
    %cst_17 = arith.constant 0.000000e+00 : f32
    %23 = vector.broadcast %cst_17 : f32 to vector<8x8xf32>
    %24 = arith.subf %23, %22 : vector<8x8xf32>
    %25 = math.exp %24 : vector<8x8xf32>
    %cst_18 = arith.constant 1.000000e+00 : f32
    %26 = vector.broadcast %cst_18 : f32 to vector<8x8xf32>
    %27 = arith.addf %26, %25 : vector<8x8xf32>
    %28 = tpu.reciprocal %27 {approx = true} : vector<8x8xf32> -> vector<8x8xf32>
    %c0_19 = arith.constant 0 : index
    %c0_20 = arith.constant 0 : index
    %29 = vector.load %arg8[%c0_19, %c0_20] : memref<8x8xf32, #tpu.memory_space<vmem>>, vector<8x8xf32>
    tpu.vector_store %arg8[%c0_19, %c0_20], %28 {strides = array<i32>} : memref<8x8xf32, #tpu.memory_space<vmem>>, vector<8x8xf32>,
    return
  }
  func.func @transform_0(%arg0: i32) -> (i32, i32) {
    %c0_i32 = arith.constant 0 : i32
    %c0_i32_0 = arith.constant 0 : i32
    return %arg0, %c0_i32 : i32, i32
  }
  func.func @transform_1(%arg0: i32) -> (i32, i32) {
    %c0_i32 = arith.constant 0 : i32
    %c0_i32_0 = arith.constant 0 : i32
    %c0_i32_1 = arith.constant 0 : i32
    return %c0_i32, %c0_i32_0 : i32, i32
  }
  func.func @transform_2(%arg0: i32) -> (i32, i32) {
    %c0_i32 = arith.constant 0 : i32
    %c0_i32_0 = arith.constant 0 : i32
    %c0_i32_1 = arith.constant 0 : i32
    return %c0_i32, %c0_i32_0 : i32, i32
  }
  func.func @transform_3(%arg0: i32) -> (i32, i32) {
    %c0_i32 = arith.constant 0 : i32
    %c0_i32_0 = arith.constant 0 : i32
    %c0_i32_1 = arith.constant 0 : i32
    return %c0_i32, %c0_i32_0 : i32, i32
  }
  func.func @transform_4(%arg0: i32) -> (i32, i32) {
    %c0_i32 = arith.constant 0 : i32
    %c0_i32_0 = arith.constant 0 : i32
    %c0_i32_1 = arith.constant 0 : i32
    return %c0_i32, %c0_i32_0 : i32, i32
  }
  func.func @transform_5(%arg0: i32) -> (i32, i32) {
    %c0_i32 = arith.constant 0 : i32
    %c0_i32_0 = arith.constant 0 : i32
    %c0_i32_1 = arith.constant 0 : i32
    return %c0_i32, %c0_i32_0 : i32, i32
  }
  func.func @transform_6(%arg0: i32) -> (i32, i32) {
    %c0_i32 = arith.constant 0 : i32
    %c0_i32_0 = arith.constant 0 : i32
    %c0_i32_1 = arith.constant 0 : i32
    return %c0_i32, %c0_i32_0 : i32, i32
  }
  func.func @transform_7(%arg0: i32) -> (i32, i32) {
    %c0_i32 = arith.constant 0 : i32
    %c0_i32_0 = arith.constant 0 : i32
    return %arg0, %c0_i32 : i32, i32
  }
}

</mosaic_0001>

<bundles_post_ra>
// kernel: tpu_custom_call.1
= control target key start
LH: loop header
LB: loop body
LE: loop exit
PB: predicated region body
PF: predicated region fallthrough
CT: control target
= control target key end

     0   :  { %s393_s24 = sld [smem:[#allocation0]]   ;;  %s434_s0 = inlined_call_operand.vmem [shape: f32[8,32], index: 0, kind: input, shape index: {}]   ;;  %s435_s1 = inlined_call_operand.vmem [shape: bf16[32,32], index: 1, kind: input, shape index: {}]   ;;  %s436_s2 = inlined_call_operand.vmem [shape: f32[1,32], index: 2, kind: input, shape index: {}]   ;;  %s437_s3 = inlined_call_operand.vmem [shape: bf16[32,16], index: 3, kind: input, shape index: {}]   ;;  %s438_s4 = inlined_call_operand.vmem [shape: f32[1,16], index: 4, kind: input, shape index: {}]   ;;  %s439_s5 = inlined_call_operand.vmem [shape: bf16[16,8], index: 5, kind: input, shape index: {}]   ;;  %s440_s6 = inlined_call_operand.vmem [shape: f32[1,8], index: 6, kind: input, shape index: {}]   ;;  %s441_s7 = inlined_call_operand.hbm [shape: f32[8,8], index: 7, kind: output, shape index: {}]  }
   0x1   :  { %v315_v0 = vld [vmem:[%s435_s1] sm:$0xff]   ;;  %v350_v1 = vmov 0.0   ;;  %v316_v2 = vld [vmem:[%s435_s1 + $0x8] sm:$0xff]   ;;  %vm351_vm0 = vmmov 0  }
   0x2   :  { %290 = vmatprep.subr.bf16.mxu0 %v350_v1  ;;  %298 = vmatprep.subr.bf16.mxu1 %v350_v1 }
   0x3   :  { %291 = vmatpush3.bf16.msra.mxu0 %v315_v0  ;;  %294 = vmatprep.mubr.msk.bf16.mxu0 %vm351_vm0, %v350_v1 }
   0x4   :  { %292 = vmatprep.subr.bf16.mxu0 %v350_v1  ;;  %302 = vmatprep.mubr.msk.bf16.mxu1 %vm351_vm0, %v350_v1 }
   0x5   :  { %12 = vsyncpa [#allocation3], 0  ;;  %v43_v3 = vld [vmem:[%s434_s0] sm:$0xff]  ;;  %vm67_vm1 = vcmask 261120   ;;  %v318_v6 = vld [vmem:[%s437_s3 + $0x8] sm:$0xff]   ;;  %vm194_vm2 = vcmask 130048  }
   0x6   :  { %v44_v4 = vpack.c.bf16 %v43_v3, %v43_v3  ;;  %v317_v5 = vld [vmem:[%s437_s3] sm:$0xff]   ;;  %s352_s15 = smov [#allocation2]   ;;  %vm243_vm3 = vcmask 64512  }
   0x7   :  { %293 = vmatpush3.bf16.msra.mxu0 %v316_v2  ;;  %299 = vmatpush3.bf16.msra.mxu1 %v317_v5  ;;  %v319_v7 = vld [vmem:[%s439_s5] sm:$0xff]   ;;  %s253_s16 = sshll.u32 %s352_s15, 4  ;;  %s254_s16 = int_to_ptr.vmem [resolvable:$true] %s253_s16 }
   0x8   :  { %306 = vmatprep.subr.bf16.mxu0 %v350_v1  ;;  %300 = vmatprep.subr.bf16.mxu1 %v350_v1  ;;  %v270_v8 = vld [vmem:[%s436_s2] ss:$0 sm:$0xff]  ;;  %p329_p1 = scmp.lt.s32.totalorder %s254_s16, %s254_s16 }
   0x9   :  { %v274_v16 = vld [vmem:[%s438_s4] ss:$0 sm:$0xff]  ;;  %s281_s4 = sshll.u32 %s393_s24, 7 }
   0xa   :  { %295 = vmatmul.mubr.msk.bf16.vlgmr.msra.gmra.mrb[0].mxu0 %vm67_vm1, %v44_v4  ;;  %v278_v24 = vld [vmem:[%s440_s6] ss:$0 sm:$0xff]  ;;  %s251_s19 = scalar_lea.hbm %s441_s7, %s281_s4  ;;  %s324_s6 = scalar_lea.vmem %s254_s16, 128 }
   0xb   :  { %308 = vmatprep.mubr.msk.bf16.mxu0 %vm351_vm0, %v350_v1  ;;  %301 = vmatpush3.bf16.msra.mxu1 %v318_v6  ;;  %p325_p0 = scmp.ne.s32.totalorder %s254_s16, %s324_s6  ;;  %p330_p2 = scmp.lt.s32.totalorder %s324_s6, %s324_s6 }
   0xc   :  { %307 = vmatpush3.bf16.msra.mxu0 %v319_v7 }
   0xd   :  { %p331_p3 = por %p330_p2, %p329_p1 }
   0xf   :  { %p332_p4 = pnand %p331_p3, %p325_p0 }
  0xdd   :  { %v105_v9 = vpop.f32.mrb[0].mxu0 }
  0xde   :  { %v106_v10 = vadd.f32 %v270_v8, %v105_v9  ;;  %v296_v11 = vpop.f32.mrb[1].mxu0 }
  0xdf   :  { %v108_v12 = vpop.f32.mrb[2].mxu0 }
  0xe0   :  { %v111_v13 = vmax.f32 %v106_v10, 0.0  ;;  %v297_v14 = vpop.f32.mrb[3].mxu0 }
  0xe2   :  { %v112_v15 = vpack.c.bf16 %v111_v13, %v111_v13 }
  0xe4   :  { %303 = vmatmul.mubr.msk.bf16.vlgmr.msra.gmra.mrb[0].mxu1 %vm67_vm1, %v112_v15 }
 0x1b7   :  { %v172_v17 = vpop.f32.mrb[0].mxu1 }
 0x1b8   :  { %v173_v18 = vadd.f32 %v274_v16, %v172_v17  ;;  %v304_v19 = vpop.f32.mrb[1].mxu1 }
 0x1b9   :  { %v175_v20 = vpop.f32.mrb[2].mxu1 }
 0x1ba   :  { %v178_v21 = vmax.f32 %v173_v18, 0.0  ;;  %v305_v22 = vpop.f32.mrb[3].mxu1 }
 0x1bc   :  { %v179_v23 = vpack.c.bf16 %v178_v21, %v178_v21 }
 0x1be   :  { %309 = vmatmul.mubr.msk.bf16.vlgmr.msra.gmra.mrb[4].mxu0 %vm194_vm2, %v179_v23 }
 0x291   :  { %v232_v25 = vpop.f32.mrb[4].mxu0 }
 0x292   :  { %v233_v26 = vadd.f32 %v278_v24, %v232_v25  ;;  %v310_v27 = vpop.f32.mrb[5].mxu0 }
 0x293   :  { %v235_v28 = vpop.f32.mrb[6].mxu0 }
 0x294   :  { %v238_v29 = vsub.f32 0.0, %v233_v26  ;;  %v311_v30 = vpop.f32.mrb[7].mxu0 }
 0x296   :  { %v239_v31 = vmul.f32 1.442695, %v238_v29 }
 0x298   :  { %320 = vpow2.f32 %v239_v31 }
 0x2a2   :  { %v321_v32 = vpop.eup %320 }
 0x2a3   :  { %v241_v33 = vadd.f32 1.0, %v321_v32 }
 0x2a5   :  { %322 = vrcp.f32 %v241_v33 }
 0x2af   :  { %v323_v34 = vpop.eup %322 }
 0x2b0   :  { %244 = vst.msk [vmem:[#allocation2] sm:$0xff] %vm243_vm3, %v323_v34 }
 0x2b1   :  { %335 = shalt.err (!%p332_p4)
}
 0x2b2   :  { %s336_s20 = scalar_lea.hbm %s251_s19, 128  ;;  %s338_s23 = scalar_lea.hbm %s441_s7, 128 }
 0x2b3   :  { %p337_p5 = scmp.ne.s32.totalorder %s251_s19, %s336_s20  ;;  %p339_p6 = scmp.lt.u32.totalorder %s251_s19, %s441_s7 }
 0x2b4   :  { %p340_p7 = scmp.lt.u32.totalorder %s338_s23, %s336_s20  ;;  %p342_p9 = scmp.lt.u32.totalorder %s336_s20, %s251_s19 }
 0x2b6   :  { %p341_p8 = por %p340_p7, %p339_p6 }
 0x2b8   :  { %p343_p10 = por %p342_p9, %p341_p8 }
 0x2ba   :  { %p344_p11 = pnand %p343_p10, %p337_p5 }
 0x2bc   :  { %347 = shalt.err (!%p344_p11)
}
 0x2bd   :  { %256 = dma.vmem_to_hbm [thread:$0]  %s254_s16, 128, %s251_s19, [#allocation3]  }
 0x2be   :  { %348 = dma.done.wait [#allocation3], 128  }
 0x2bf   :  { %349 = vsyncadd [#allocation3], 4294967168 }
 0x2c0   :  { %260 = vsyncpa [#allocation3], 1 }

// kernel: tpu_custom_call.1
= control target key start
LH: loop header
LB: loop body
LE: loop exit
PB: predicated region body
PF: predicated region fallthrough
CT: control target
= control target key end

     0   :  { %v324_v1 = vmov 0.0   ;;  %vm325_vm0 = vmmov 0   ;;  %s408_s0 = inlined_call_operand.vmem [shape: f32[8,32], index: 0, kind: input, shape index: {}]   ;;  %s409_s1 = inlined_call_operand.vmem [shape: bf16[32,32], index: 1, kind: input, shape index: {}]   ;;  %s410_s2 = inlined_call_operand.vmem [shape: f32[1,32], index: 2, kind: input, shape index: {}]   ;;  %s411_s3 = inlined_call_operand.vmem [shape: bf16[32,16], index: 3, kind: input, shape index: {}]   ;;  %s412_s4 = inlined_call_operand.vmem [shape: f32[1,16], index: 4, kind: input, shape index: {}]   ;;  %s413_s5 = inlined_call_operand.vmem [shape: bf16[16,8], index: 5, kind: input, shape index: {}]   ;;  %s414_s6 = inlined_call_operand.vmem [shape: f32[1,8], index: 6, kind: input, shape index: {}]   ;;  %s415_s7 = inlined_call_operand.hbm [shape: f32[8,8], index: 7, kind: output, shape index: {}]  }
   0x1   :  { %v291_v0 = vld [vmem:[%s409_s1] sm:$0xff]   ;;  %266 = vmatprep.subr.bf16.mxu0 %v324_v1  ;;  %274 = vmatprep.subr.bf16.mxu1 %v324_v1  ;;  %v292_v2 = vld [vmem:[%s409_s1 + $0x8] sm:$0xff]  }
   0x2   :  { %267 = vmatpush3.bf16.msra.mxu0 %v291_v0  ;;  %270 = vmatprep.mubr.msk.bf16.mxu0 %vm325_vm0, %v324_v1  ;;  %v31_v3 = vld [vmem:[%s408_s0] sm:$0xff] }
   0x3   :  { %268 = vmatprep.subr.bf16.mxu0 %v324_v1  ;;  %278 = vmatprep.mubr.msk.bf16.mxu1 %vm325_vm0, %v324_v1 }
   0x4   :  { %12 = vsyncpa [#allocation3], 0  ;;  %v32_v4 = vpack.c.bf16 %v31_v3, %v31_v3  ;;  %vm55_vm1 = vcmask 261120   ;;  %v293_v5 = vld [vmem:[%s411_s3] sm:$0xff]   ;;  %v294_v6 = vld [vmem:[%s411_s3 + $0x8] sm:$0xff]   ;;  %vm182_vm2 = vcmask 130048  }
   0x5   :  { %275 = vmatpush3.bf16.msra.mxu1 %v293_v5  ;;  %v295_v7 = vld [vmem:[%s413_s5] sm:$0xff]   ;;  %vm231_vm3 = vcmask 64512  }
   0x6   :  { %269 = vmatpush3.bf16.msra.mxu0 %v292_v2  ;;  %276 = vmatprep.subr.bf16.mxu1 %v324_v1  ;;  %v247_v8 = vld [vmem:[%s410_s2] ss:$0 sm:$0xff] }
   0x7   :  { %282 = vmatprep.subr.bf16.mxu0 %v324_v1  ;;  %v251_v16 = vld [vmem:[%s412_s4] ss:$0 sm:$0xff]  ;;  %s326_s4 = smov [#allocation2]  }
   0x8   :  { %v255_v24 = vld [vmem:[%s414_s6] ss:$0 sm:$0xff]  ;;  %s239_s14 = sshll.u32 %s326_s4, 4  ;;  %s240_s14 = int_to_ptr.vmem [resolvable:$true] %s239_s14 }
   0x9   :  { %271 = vmatmul.mubr.msk.bf16.vlgmr.msra.gmra.mrb[0].mxu0 %vm55_vm1, %v32_v4  ;;  %277 = vmatpush3.bf16.msra.mxu1 %v294_v6  ;;  %s300_s15 = scalar_lea.vmem %s240_s14, 128  ;;  %p305_p1 = scmp.lt.s32.totalorder %s240_s14, %s240_s14 }
   0xa   :  { %284 = vmatprep.mubr.msk.bf16.mxu0 %vm325_vm0, %v324_v1  ;;  %283 = vmatpush3.bf16.msra.mxu0 %v295_v7  ;;  %p301_p0 = scmp.ne.s32.totalorder %s240_s14, %s300_s15  ;;  %p306_p2 = scmp.lt.s32.totalorder %s300_s15, %s300_s15 }
   0xc   :  { %p307_p3 = por %p306_p2, %p305_p1 }
   0xe   :  { %p308_p4 = pnand %p307_p3, %p301_p0 }
  0xdc   :  { %v93_v9 = vpop.f32.mrb[0].mxu0 }
  0xdd   :  { %v94_v10 = vadd.f32 %v247_v8, %v93_v9  ;;  %v272_v11 = vpop.f32.mrb[1].mxu0 }
  0xde   :  { %v96_v12 = vpop.f32.mrb[2].mxu0 }
  0xdf   :  { %v99_v13 = vmax.f32 %v94_v10, 0.0  ;;  %v273_v14 = vpop.f32.mrb[3].mxu0 }
  0xe1   :  { %v100_v15 = vpack.c.bf16 %v99_v13, %v99_v13 }
  0xe3   :  { %279 = vmatmul.mubr.msk.bf16.vlgmr.msra.gmra.mrb[0].mxu1 %vm55_vm1, %v100_v15 }
 0x1b6   :  { %v160_v17 = vpop.f32.mrb[0].mxu1 }
 0x1b7   :  { %v161_v18 = vadd.f32 %v251_v16, %v160_v17  ;;  %v280_v19 = vpop.f32.mrb[1].mxu1 }
 0x1b8   :  { %v163_v20 = vpop.f32.mrb[2].mxu1 }
 0x1b9   :  { %v166_v21 = vmax.f32 %v161_v18, 0.0  ;;  %v281_v22 = vpop.f32.mrb[3].mxu1 }
 0x1bb   :  { %v167_v23 = vpack.c.bf16 %v166_v21, %v166_v21 }
 0x1bd   :  { %285 = vmatmul.mubr.msk.bf16.vlgmr.msra.gmra.mrb[4].mxu0 %vm182_vm2, %v167_v23 }
 0x290   :  { %v220_v25 = vpop.f32.mrb[4].mxu0 }
 0x291   :  { %v221_v26 = vadd.f32 %v255_v24, %v220_v25  ;;  %v286_v27 = vpop.f32.mrb[5].mxu0 }
 0x292   :  { %v223_v28 = vpop.f32.mrb[6].mxu0 }
 0x293   :  { %v226_v29 = vsub.f32 0.0, %v221_v26  ;;  %v287_v30 = vpop.f32.mrb[7].mxu0 }
 0x295   :  { %v227_v31 = vmul.f32 1.442695, %v226_v29 }
 0x297   :  { %296 = vpow2.f32 %v227_v31 }
 0x2a1   :  { %v297_v32 = vpop.eup %296 }
 0x2a2   :  { %v229_v33 = vadd.f32 1.0, %v297_v32 }
 0x2a4   :  { %298 = vrcp.f32 %v229_v33 }
 0x2ae   :  { %v299_v34 = vpop.eup %298 }
 0x2af   :  { %232 = vst.msk [vmem:[#allocation2] sm:$0xff] %vm231_vm3, %v299_v34 }
 0x2b0   :  { %311 = shalt.err (!%p308_p4)
}
 0x2b1   :  { %s312_s17 = scalar_lea.hbm %s415_s7, 128 }
 0x2b2   :  { %p313_p5 = scmp.ne.s32.totalorder %s415_s7, %s312_s17  ;;  %p316_p6 = scmp.lt.u32.totalorder %s312_s17, %s415_s7 }
 0x2b4   :  { %p318_p7 = pnand %p316_p6, %p313_p5 }
 0x2b6   :  { %321 = shalt.err (!%p318_p7)
}
 0x2b7   :  { %242 = dma.vmem_to_hbm [thread:$0]  %s240_s14, 128, %s415_s7, [#allocation3]  }
 0x2b8   :  { %322 = dma.done.wait [#allocation3], 128  }
 0x2b9   :  { %323 = vsyncadd [#allocation3], 4294967168 }
 0x2ba   :  { %246 = vsyncpa [#allocation3], 1 }

// kernel: tpu_custom_call.1
= control target key start
LH: loop header
LB: loop body
LE: loop exit
PB: predicated region body
PF: predicated region fallthrough
CT: control target
= control target key end

     0   :  { %v324_v1 = vmov 0.0   ;;  %vm325_vm0 = vmmov 0   ;;  %s408_s0 = inlined_call_operand.vmem [shape: f32[8,32], index: 0, kind: input, shape index: {}]   ;;  %s409_s1 = inlined_call_operand.vmem [shape: bf16[32,32], index: 1, kind: input, shape index: {}]   ;;  %s410_s2 = inlined_call_operand.vmem [shape: f32[1,32], index: 2, kind: input, shape index: {}]   ;;  %s411_s3 = inlined_call_operand.vmem [shape: bf16[32,16], index: 3, kind: input, shape index: {}]   ;;  %s412_s4 = inlined_call_operand.vmem [shape: f32[1,16], index: 4, kind: input, shape index: {}]   ;;  %s413_s5 = inlined_call_operand.vmem [shape: bf16[16,8], index: 5, kind: input, shape index: {}]   ;;  %s414_s6 = inlined_call_operand.vmem [shape: f32[1,8], index: 6, kind: input, shape index: {}]   ;;  %s415_s7 = inlined_call_operand.hbm [shape: f32[8,8], index: 7, kind: output, shape index: {}]  }
   0x1   :  { %v291_v0 = vld [vmem:[%s409_s1] sm:$0xff]   ;;  %266 = vmatprep.subr.bf16.mxu0 %v324_v1  ;;  %274 = vmatprep.subr.bf16.mxu1 %v324_v1  ;;  %v292_v2 = vld [vmem:[%s409_s1 + $0x8] sm:$0xff]  }
   0x2   :  { %267 = vmatpush3.bf16.msra.mxu0 %v291_v0  ;;  %270 = vmatprep.mubr.msk.bf16.mxu0 %vm325_vm0, %v324_v1  ;;  %v31_v3 = vld [vmem:[%s408_s0] sm:$0xff] }
   0x3   :  { %268 = vmatprep.subr.bf16.mxu0 %v324_v1  ;;  %278 = vmatprep.mubr.msk.bf16.mxu1 %vm325_vm0, %v324_v1 }
   0x4   :  { %12 = vsyncpa [#allocation3], 0  ;;  %v32_v4 = vpack.c.bf16 %v31_v3, %v31_v3  ;;  %vm55_vm1 = vcmask 261120   ;;  %v293_v5 = vld [vmem:[%s411_s3] sm:$0xff]   ;;  %v294_v6 = vld [vmem:[%s411_s3 + $0x8] sm:$0xff]   ;;  %vm182_vm2 = vcmask 130048  }
   0x5   :  { %275 = vmatpush3.bf16.msra.mxu1 %v293_v5  ;;  %v295_v7 = vld [vmem:[%s413_s5] sm:$0xff]   ;;  %vm231_vm3 = vcmask 64512  }
   0x6   :  { %269 = vmatpush3.bf16.msra.mxu0 %v292_v2  ;;  %276 = vmatprep.subr.bf16.mxu1 %v324_v1  ;;  %v247_v8 = vld [vmem:[%s410_s2] ss:$0 sm:$0xff] }
   0x7   :  { %282 = vmatprep.subr.bf16.mxu0 %v324_v1  ;;  %v251_v16 = vld [vmem:[%s412_s4] ss:$0 sm:$0xff]  ;;  %s326_s4 = smov [#allocation2]  }
   0x8   :  { %v255_v24 = vld [vmem:[%s414_s6] ss:$0 sm:$0xff]  ;;  %s239_s14 = sshll.u32 %s326_s4, 4  ;;  %s240_s14 = int_to_ptr.vmem [resolvable:$true] %s239_s14 }
   0x9   :  { %271 = vmatmul.mubr.msk.bf16.vlgmr.msra.gmra.mrb[0].mxu0 %vm55_vm1, %v32_v4  ;;  %277 = vmatpush3.bf16.msra.mxu1 %v294_v6  ;;  %s300_s15 = scalar_lea.vmem %s240_s14, 128  ;;  %p305_p1 = scmp.lt.s32.totalorder %s240_s14, %s240_s14 }
   0xa   :  { %284 = vmatprep.mubr.msk.bf16.mxu0 %vm325_vm0, %v324_v1  ;;  %283 = vmatpush3.bf16.msra.mxu0 %v295_v7  ;;  %p301_p0 = scmp.ne.s32.totalorder %s240_s14, %s300_s15  ;;  %p306_p2 = scmp.lt.s32.totalorder %s300_s15, %s300_s15 }
   0xc   :  { %p307_p3 = por %p306_p2, %p305_p1 }
   0xe   :  { %p308_p4 = pnand %p307_p3, %p301_p0 }
  0xdc   :  { %v93_v9 = vpop.f32.mrb[0].mxu0 }
  0xdd   :  { %v94_v10 = vadd.f32 %v247_v8, %v93_v9  ;;  %v272_v11 = vpop.f32.mrb[1].mxu0 }
  0xde   :  { %v96_v12 = vpop.f32.mrb[2].mxu0 }
  0xdf   :  { %v99_v13 = vmax.f32 %v94_v10, 0.0  ;;  %v273_v14 = vpop.f32.mrb[3].mxu0 }
  0xe1   :  { %v100_v15 = vpack.c.bf16 %v99_v13, %v99_v13 }
  0xe3   :  { %279 = vmatmul.mubr.msk.bf16.vlgmr.msra.gmra.mrb[0].mxu1 %vm55_vm1, %v100_v15 }
 0x1b6   :  { %v160_v17 = vpop.f32.mrb[0].mxu1 }
 0x1b7   :  { %v161_v18 = vadd.f32 %v251_v16, %v160_v17  ;;  %v280_v19 = vpop.f32.mrb[1].mxu1 }
 0x1b8   :  { %v163_v20 = vpop.f32.mrb[2].mxu1 }
 0x1b9   :  { %v166_v21 = vmax.f32 %v161_v18, 0.0  ;;  %v281_v22 = vpop.f32.mrb[3].mxu1 }
 0x1bb   :  { %v167_v23 = vpack.c.bf16 %v166_v21, %v166_v21 }
 0x1bd   :  { %285 = vmatmul.mubr.msk.bf16.vlgmr.msra.gmra.mrb[4].mxu0 %vm182_vm2, %v167_v23 }
 0x290   :  { %v220_v25 = vpop.f32.mrb[4].mxu0 }
 0x291   :  { %v221_v26 = vadd.f32 %v255_v24, %v220_v25  ;;  %v286_v27 = vpop.f32.mrb[5].mxu0 }
 0x292   :  { %v223_v28 = vpop.f32.mrb[6].mxu0 }
 0x293   :  { %v226_v29 = vsub.f32 0.0, %v221_v26  ;;  %v287_v30 = vpop.f32.mrb[7].mxu0 }
 0x295   :  { %v227_v31 = vmul.f32 1.442695, %v226_v29 }
 0x297   :  { %296 = vpow2.f32 %v227_v31 }
 0x2a1   :  { %v297_v32 = vpop.eup %296 }
 0x2a2   :  { %v229_v33 = vadd.f32 1.0, %v297_v32 }
 0x2a4   :  { %298 = vrcp.f32 %v229_v33 }
 0x2ae   :  { %v299_v34 = vpop.eup %298 }
 0x2af   :  { %232 = vst.msk [vmem:[#allocation2] sm:$0xff] %vm231_vm3, %v299_v34 }
 0x2b0   :  { %311 = shalt.err (!%p308_p4)
}
 0x2b1   :  { %s312_s17 = scalar_lea.hbm %s415_s7, 128 }
 0x2b2   :  { %p313_p5 = scmp.ne.s32.totalorder %s415_s7, %s312_s17  ;;  %p316_p6 = scmp.lt.u32.totalorder %s312_s17, %s415_s7 }
 0x2b4   :  { %p318_p7 = pnand %p316_p6, %p313_p5 }
 0x2b6   :  { %321 = shalt.err (!%p318_p7)
}
 0x2b7   :  { %242 = dma.vmem_to_hbm [thread:$0]  %s240_s14, 128, %s415_s7, [#allocation3]  }
 0x2b8   :  { %322 = dma.done.wait [#allocation3], 128  }
 0x2b9   :  { %323 = vsyncadd [#allocation3], 4294967168 }
 0x2ba   :  { %246 = vsyncpa [#allocation3], 1 }

</bundles_post_ra>
